<compile_context>
chip_gen: v7x
topology: tpu7x:2x2x1
jax: 0.10.0
libtpu: 0.0.40
codegen_flags: <defaults>
</compile_context>

<pallas_src>
import functools
import math

import jax
import jax.numpy as jnp
from jax.experimental import pallas as pl
from jax.experimental.pallas import tpu as pltpu

EPS = 1e-5        # nn.LayerNorm default
NEG_INF = -1e30


# --------------------------------------------------------------------------
# Small helpers
# --------------------------------------------------------------------------
def _round_up(n, m):
    return ((n + m - 1) // m) * m


def _pick_tile(n, preferred):
    """Largest sublane-aligned tile <= preferred that divides n (fallback: n)."""
    if n <= preferred:
        return n
    t = preferred
    while t >= 8:
        if n % t == 0:
            return t
        t -= 8
    return n


@functools.lru_cache(maxsize=None)
def _vmem_limit_bytes():
    """Per-generation VMEM limit: ~48 MiB on v7x (64 MiB phys), ~96 MiB on v5e/v6e."""
    cap = 64 * 1024 * 1024
    try:
        cap = int(pltpu.get_tpu_info().vmem_capacity_bytes)
    except Exception:
        pass
    return min((cap * 3) // 4, 100 * 1024 * 1024)


def _const_spec(shape):
    """Whole-array block with a constant index map, single-buffered.

    Weights / biases never change across the grid, so double-buffering them only
    wastes VMEM (matters most on v7x's 64 MiB VMEM)."""
    zeros = (0,) * len(shape)
    index_map = lambda *args: zeros
    try:
        return pl.BlockSpec(shape, index_map, pipeline_mode=pl.Buffered(1))
    except Exception:                      # older jax w/o pipeline_mode / Buffered
        return pl.BlockSpec(shape, index_map)


def _layer_norm(x, w, b):
    mu = jnp.mean(x, axis=-1, keepdims=True)
    var = jnp.mean((x - mu) ** 2, axis=-1, keepdims=True)
    return (x - mu) * jax.lax.rsqrt(var + EPS) * w + b


# --------------------------------------------------------------------------
# Kernel 1: LayerNorm1 + fused QKV projection -> head-major bf16 q/k/v
# --------------------------------------------------------------------------
def _ln_qkv_kernel(x_ref, ln1w_ref, ln1b_ref, wqkv_ref, bqkv_ref,
                   h_ref, q_ref, k_ref, v_ref):
    x = x_ref[0]                                           # (tq, E) f32
    tq, E = x.shape
    n_heads = q_ref.shape[1]
    hd = q_ref.shape[3]

    h = _layer_norm(x, ln1w_ref[...], ln1b_ref[...])       # f32
    h_ref[0] = h

    # One fused bf16 (tq,E)@(E,3E) matmul, f32 accumulation.  1/sqrt(hd) is
    # already folded into the Q columns of wqkv (and bqkv) at prepare time.
    qkv = jnp.dot(h.astype(jnp.bfloat16), wqkv_ref[...],
                  preferred_element_type=jnp.float32) + bqkv_ref[...]   # (tq, 3E)

    def to_heads(mat):                                     # (tq, E) -> (H, tq, hd)
        return jnp.transpose(mat.reshape(tq, n_heads, hd), (1, 0, 2)).astype(jnp.bfloat16)

    q_ref[0] = to_heads(qkv[:, :E])
    k_ref[0] = to_heads(qkv[:, E:2 * E])
    v_ref[0] = to_heads(qkv[:, 2 * E:3 * E])


# --------------------------------------------------------------------------
# Kernel 2: q-row-tiled causal attention (+ output projection)
# --------------------------------------------------------------------------
def _attn_kernel(q_ref, k_ref, v_ref, wo_ref, bo_ref, attn_ref, out_ref):
    q = q_ref[0]                                           # (H, tq, hd) bf16, pre-scaled
    k = k_ref[0]                                           # (H, S,  hd) bf16
    v = v_ref[0]                                           # (H, S,  hd) bf16
    H, tq, hd = q.shape
    S = k.shape[1]

    s = jnp.einsum('hqd,hkd->hqk', q, k,
                   preferred_element_type=jnp.float32)     # (H, tq, S) f32

    # Causal mask generated in-kernel (no (S,S) mask DMA / VMEM residency).
    q0 = pl.program_id(1) * tq
    rows = jax.lax.broadcasted_iota(jnp.int32, (H, tq, S), 1) + q0
    cols = jax.lax.broadcasted_iota(jnp.int32, (H, tq, S), 2)
    s = jnp.where(rows >= cols, s, NEG_INF)

    m = jnp.max(s, axis=-1, keepdims=True)
    e = jnp.exp(s - m)
    denom = jnp.sum(e, axis=-1, keepdims=True)
    p = e * pl.reciprocal(denom, approx=True)              # softmax (EUP reciprocal)
    attn_ref[0] = p.astype(attn_ref.dtype)

    ctx = jnp.einsum('hqk,hkd->hqd', p.astype(jnp.bfloat16), v,
                     preferred_element_type=jnp.float32)   # (H, tq, hd) f32

    # Merge heads with one transpose+reshape (no per-head loop / scratch).
    ctx2d = jnp.transpose(ctx, (1, 0, 2)).reshape(tq, H * hd)
    out_ref[0] = (jnp.dot(ctx2d.astype(jnp.bfloat16), wo_ref[...],
                          preferred_element_type=jnp.float32) + bo_ref[...])


# --------------------------------------------------------------------------
# Kernel 3: residual + LayerNorm2 + MLP (+ residual), row-tiled over (B*S)
# --------------------------------------------------------------------------
def _mlp_kernel(with_residuals, h_ref, a_ref, ln2w_ref, ln2b_ref,
                w1_ref, b1_ref, w2_ref, b2_ref, out_ref):
    a = a_ref[...]                                         # attention output (tr, E)
    if with_residuals:
        # torch: x = LN1(inputs); x = x + attn; x = LN2(x); out = x + mlp(x)
        x1 = h_ref[...] + a
    else:
        x1 = a
    h2 = _layer_norm(x1, ln2w_ref[...], ln2b_ref[...])

    m1 = jnp.dot(h2.astype(jnp.bfloat16), w1_ref[...],
                 preferred_element_type=jnp.float32) + b1_ref[...]
    m1 = jax.nn.gelu(m1)                                   # tanh approx (see TODO)
    mlp_out = jnp.dot(m1.astype(jnp.bfloat16), w2_ref[...],
                      preferred_element_type=jnp.float32) + b2_ref[...]

    out_ref[...] = (h2 + mlp_out) if with_residuals else mlp_out


# --------------------------------------------------------------------------
# Kernel 4: final LayerNorm + vocab projection (LN cached across vocab tiles)
# --------------------------------------------------------------------------
def _lm_head_kernel(x_ref, lnw_ref, lnb_ref, wp_ref, bp_ref, logits_ref, hcache):
    @pl.when(pl.program_id(1) == 0)
    def _():
        hcache[...] = _layer_norm(x_ref[...], lnw_ref[...],
                                  lnb_ref[...]).astype(jnp.bfloat16)
    logits_ref[...] = (jnp.dot(hcache[...], wp_ref[...],
                               preferred_element_type=jnp.float32) + bp_ref[...])


# --------------------------------------------------------------------------
# Layer wrapper (three pallas_calls)
# --------------------------------------------------------------------------
def transformer_block(x, layer, n_heads, with_residuals,
                      attn_weights_dtype=jnp.float32):
    B, S, E = x.shape
    assert E % n_heads == 0
    hd = E // n_heads
    Hm = layer["w1"].shape[1]
    tq = _pick_tile(S, 128)
    nq = S // tq
    vmem = _vmem_limit_bytes()

    # ---- kernel 1: LN1 + fused QKV ----
    h, q, k, v = pl.pallas_call(
        _ln_qkv_kernel,
        out_shape=(jax.ShapeDtypeStruct((B, S, E), jnp.float32),
                   jax.ShapeDtypeStruct((B, n_heads, S, hd), jnp.bfloat16),
                   jax.ShapeDtypeStruct((B, n_heads, S, hd), jnp.bfloat16),
                   jax.ShapeDtypeStruct((B, n_heads, S, hd), jnp.bfloat16)),
        grid_spec=pltpu.PrefetchScalarGridSpec(
            num_scalar_prefetch=0,
            grid=(B, nq),
            in_specs=[pl.BlockSpec((1, tq, E), lambda b, i: (b, i, 0)),
                      _const_spec((1, E)),
                      _const_spec((1, E)),
                      _const_spec((E, 3 * E)),
                      _const_spec((1, 3 * E))],
            out_specs=(pl.BlockSpec((1, tq, E), lambda b, i: (b, i, 0)),
                       pl.BlockSpec((1, n_heads, tq, hd), lambda b, i: (b, 0, i, 0)),
                       pl.BlockSpec((1, n_heads, tq, hd), lambda b, i: (b, 0, i, 0)),
                       pl.BlockSpec((1, n_heads, tq, hd), lambda b, i: (b, 0, i, 0)))),
        compiler_params=pltpu.CompilerParams(
            dimension_semantics=("parallel", "parallel"),
            vmem_limit_bytes=vmem),
    )(x, layer["ln1w"], layer["ln1b"], layer["wqkv"], layer["bqkv"])

    # ---- kernel 2: q-tiled causal attention + output projection ----
    attn_w, attn_out = pl.pallas_call(
        _attn_kernel,
        out_shape=(jax.ShapeDtypeStruct((B, n_heads, S, S), attn_weights_dtype),
                   jax.ShapeDtypeStruct((B, S, E), jnp.float32)),
        grid_spec=pltpu.PrefetchScalarGridSpec(
            num_scalar_prefetch=0,
            grid=(B, nq),
            in_specs=[pl.BlockSpec((1, n_heads, tq, hd), lambda b, i: (b, 0, i, 0)),
                      pl.BlockSpec((1, n_heads, S, hd), lambda b, i: (b, 0, 0, 0)),
                      pl.BlockSpec((1, n_heads, S, hd), lambda b, i: (b, 0, 0, 0)),
                      _const_spec((E, E)),
                      _const_spec((1, E))],
            out_specs=(pl.BlockSpec((1, n_heads, tq, S), lambda b, i: (b, 0, i, 0)),
                       pl.BlockSpec((1, tq, E), lambda b, i: (b, i, 0)))),
        compiler_params=pltpu.CompilerParams(
            dimension_semantics=("parallel", "parallel"),
            vmem_limit_bytes=vmem),
    )(q, k, v, layer["wo"], layer["bo"])

    # ---- kernel 3: residual + LN2 + MLP, folded (B*S) row tiles ----
    R = B * S
    tr = _pick_tile(R, 256)
    out2d = pl.pallas_call(
        functools.partial(_mlp_kernel, with_residuals),
        out_shape=jax.ShapeDtypeStruct((R, E), jnp.float32),
        grid_spec=pltpu.PrefetchScalarGridSpec(
            num_scalar_prefetch=0,
            grid=(R // tr,),
            in_specs=[pl.BlockSpec((tr, E), lambda r: (r, 0)),
                      pl.BlockSpec((tr, E), lambda r: (r, 0)),
                      _const_spec((1, E)),
                      _const_spec((1, E)),
                      _const_spec((E, Hm)),
                      _const_spec((1, Hm)),
                      _const_spec((Hm, E)),
                      _const_spec((1, E))],
            out_specs=pl.BlockSpec((tr, E), lambda r: (r, 0))),
        compiler_params=pltpu.CompilerParams(
            dimension_semantics=("parallel",),
            vmem_limit_bytes=vmem),
    )(h.reshape(R, E), attn_out.reshape(R, E),
      layer["ln2w"], layer["ln2b"],
      layer["w1"], layer["b1"], layer["w2"], layer["b2"])

    return out2d.reshape(B, S, E), attn_w


# --------------------------------------------------------------------------
# LM head wrapper (128-aligned padded vocab, LN cached across vocab tiles)
# --------------------------------------------------------------------------
def lm_head(x, lnw, lnb, wp_pad, bp_pad, vocab_size):
    B, S, E = x.shape
    Vp = wp_pad.shape[1]
    R = B * S
    tr = _pick_tile(R, 256)
    tv = min(2048, Vp)                  # Vp is a multiple of tv by construction
    logits = pl.pallas_call(
        _lm_head_kernel,
        out_shape=jax.ShapeDtypeStruct((R, Vp), jnp.float32),
        grid_spec=pltpu.PrefetchScalarGridSpec(
            num_scalar_prefetch=0,
            grid=(R // tr, Vp // tv),
            in_specs=[pl.BlockSpec((tr, E), lambda r, j: (r, 0)),
                      _const_spec((1, E)),
                      _const_spec((1, E)),
                      pl.BlockSpec((E, tv), lambda r, j: (0, j)),
                      pl.BlockSpec((1, tv), lambda r, j: (0, j))],
            out_specs=pl.BlockSpec((tr, tv), lambda r, j: (r, j)),
            scratch_shapes=[pltpu.VMEM((tr, E), jnp.bfloat16)]),
        compiler_params=pltpu.CompilerParams(
            # vocab axis must stay sequential per row tile (LN cache reuse).
            dimension_semantics=("parallel", "arbitrary"),
            vmem_limit_bytes=_vmem_limit_bytes()),
    )(x.reshape(R, E), lnw, lnb, wp_pad, bp_pad)
    return logits[:, :vocab_size].reshape(B, S, vocab_size)


# --------------------------------------------------------------------------
# Parameters: init (Normal(0,0.02)/zeros/ones) + one-time kernel-friendly prep
# --------------------------------------------------------------------------
def init_params(key, n_layers, n_heads, E, max_ctx, V, H):
    std = 0.02
    ks = iter(jax.random.split(key, 4 + n_layers * 6))
    params = {
        "tok_emb": jax.random.normal(next(ks), (V, E), jnp.float32) * std,
        "pos_emb": jax.random.normal(next(ks), (max_ctx, E), jnp.float32) * std,
        "final_lnw": jnp.ones((1, E), jnp.float32),
        "final_lnb": jnp.zeros((1, E), jnp.float32),
        "wp": jax.random.normal(next(ks), (E, V), jnp.float32) * std,
        "bp": jnp.zeros((1, V), jnp.float32),
        "layers": [],
    }
    for _ in range(n_layers):
        params["layers"].append({
            "ln1w": jnp.ones((1, E), jnp.float32),
            "ln1b": jnp.zeros((1, E), jnp.float32),
            "wq": jax.random.normal(next(ks), (E, E), jnp.float32) * std,
            "bq": jnp.zeros((1, E), jnp.float32),
            "wk": jax.random.normal(next(ks), (E, E), jnp.float32) * std,
            "bk": jnp.zeros((1, E), jnp.float32),
            "wv": jax.random.normal(next(ks), (E, E), jnp.float32) * std,
            "bv": jnp.zeros((1, E), jnp.float32),
            "wo": jax.random.normal(next(ks), (E, E), jnp.float32) * std,
            "bo": jnp.zeros((1, E), jnp.float32),
            "ln2w": jnp.ones((1, E), jnp.float32),
            "ln2b": jnp.zeros((1, E), jnp.float32),
            "w1": jax.random.normal(next(ks), (E, H), jnp.float32) * std,
            "b1": jnp.zeros((1, H), jnp.float32),
            "w2": jax.random.normal(next(ks), (H, E), jnp.float32) * std,
            "b2": jnp.zeros((1, E), jnp.float32),
        })
    return params


def prepare_params(params, n_heads):
    """One-time weight prep (hoisted out of the forward pass): fuse Q/K/V with
    1/sqrt(hd) folded into Q, cast matmul weights to bf16, pad vocab to a
    128-aligned tile multiple."""
    E = params["tok_emb"].shape[1]
    hd = E // n_heads
    scale = 1.0 / math.sqrt(hd)
    V = params["wp"].shape[1]
    tv = min(2048, _round_up(V, 128))
    Vp = _round_up(V, tv)

    fast = {
        "tok_emb": params["tok_emb"],
        "pos_emb": params["pos_emb"],
        "final_lnw": params["final_lnw"],
        "final_lnb": params["final_lnb"],
        "wp_pad": jnp.pad(params["wp"], ((0, 0), (0, Vp - V))).astype(jnp.bfloat16),
        "bp_pad": jnp.pad(params["bp"], ((0, 0), (0, Vp - V))),
        "vocab_size": V,
        "layers": [],
    }
    for p in params["layers"]:
        fast["layers"].append({
            "ln1w": p["ln1w"], "ln1b": p["ln1b"],
            "wqkv": jnp.concatenate([p["wq"] * scale, p["wk"], p["wv"]],
                                    axis=1).astype(jnp.bfloat16),
            "bqkv": jnp.concatenate([p["bq"] * scale, p["bk"], p["bv"]], axis=1),
            "wo": p["wo"].astype(jnp.bfloat16), "bo": p["bo"],
            "ln2w": p["ln2w"], "ln2b": p["ln2b"],
            "w1": p["w1"].astype(jnp.bfloat16), "b1": p["b1"],
            "w2": p["w2"].astype(jnp.bfloat16), "b2": p["b2"],
        })
    return fast


def transformer_lm_forward(inputs, fast_params, n_heads, with_residuals,
                           attn_weights_dtype=jnp.float32):
    B, S = inputs.shape
    max_ctx = fast_params["pos_emb"].shape[0]
    if S > max_ctx:
        raise ValueError(f"Sequence length {S} exceeds maximum context length {max_ctx}")

    # Embedding gather + positional add: plain-JAX wrapper glue.
    x = jnp.take(fast_params["tok_emb"], inputs, axis=0) + fast_params["pos_emb"][:S][None]

    attentions = []
    for layer in fast_params["layers"]:
        x, attn = transformer_block(x, layer, n_heads, with_residuals,
                                    attn_weights_dtype=attn_weights_dtype)
        attentions.append(attn)

    logits = lm_head(x, fast_params["final_lnw"], fast_params["final_lnb"],
                     fast_params["wp_pad"], fast_params["bp_pad"],
                     fast_params["vocab_size"])
    return logits, attentions


# --------------------------------------------------------------------------
# Pure-JAX f32 reference (numerics sanity check)
# --------------------------------------------------------------------------
def _ref_forward(inputs, params, n_heads, with_residuals):
    B, S = inputs.shape
    x = jnp.take(params["tok_emb"], inputs, axis=0) + params["pos_emb"][:S][None]
    causal = jnp.tril(jnp.ones((S, S), bool))
    attns = []
    for p in params["layers"]:
        h = _layer_norm(x, p["ln1w"], p["ln1b"])
        E = h.shape[-1]
        hd = E // n_heads
        q = (h @ p["wq"] + p["bq"]).reshape(B, S, n_heads, hd).transpose(0, 2, 1, 3)
        k = (h @ p["wk"] + p["bk"]).reshape(B, S, n_heads, hd).transpose(0, 2, 1, 3)
        v = (h @ p["wv"] + p["bv"]).reshape(B, S, n_heads, hd).transpose(0, 2, 1, 3)
        s = jnp.einsum('bhqd,bhkd->bhqk', q, k) / math.sqrt(hd)
        s = jnp.where(causal, s, NEG_INF)
        pw = jax.nn.softmax(s, axis=-1)
        attns.append(pw)
        ctx = jnp.einsum('bhqk,bhkd->bhqd', pw, v).transpose(0, 2, 1, 3).reshape(B, S, E)
        attn_out = ctx @ p["wo"] + p["bo"]
        mlp = lambda z: jax.nn.gelu(z @ p["w1"] + p["b1"]) @ p["w2"] + p["b2"]
        if with_residuals:
            x1 = h + attn_out
            h2 = _layer_norm(x1, p["ln2w"], p["ln2b"])
            x = h2 + mlp(h2)
        else:
            h2 = _layer_norm(attn_out, p["ln2w"], p["ln2b"])
            x = mlp(h2)
    h = _layer_norm(x, params["final_lnw"], params["final_lnb"])
    return h @ params["wp"] + params["bp"], attns


if __name__ == "__main__":
    # Small config consistent with the module's constructor.
    n_layers, n_heads = 2, 4
    embed_size, mlp_hidden_size = 32, 64
    max_context_len, vocab_size = 16, 64
    with_residuals = True
    B, S = 2, 8

    key = jax.random.PRNGKey(0)
    pkey, ikey = jax.random.split(key)
    params = init_params(pkey, n_layers, n_heads, embed_size,
                         max_context_len, vocab_size, mlp_hidden_size)
    fast = prepare_params(params, n_heads)          # one-time weight prep (hoisted)
    inputs = jax.random.randint(ikey, (B, S), 0, vocab_size, dtype=jnp.int32)

    logits, attentions = transformer_lm_forward(inputs, fast, n_heads, with_residuals)
    logits = jax.block_until_ready(logits)
    attentions = [jax.block_until_ready(a) for a in attentions]

    assert logits.shape == (B, S, vocab_size)
    assert len(attentions) == n_layers
    assert all(a.shape == (B, n_heads, S, S) for a in attentions)

    # Numerics check vs f32 reference (bf16 MXU + approx reciprocal => loose tol).
    ref_logits, ref_attns = _ref_forward(inputs, params, n_heads, with_residuals)
    assert jnp.allclose(logits, ref_logits, atol=2e-2, rtol=2e-2), \
        float(jnp.max(jnp.abs(logits - ref_logits)))
    for a, r in zip(attentions, ref_attns):
        assert jnp.allclose(a, r, atol=2e-2, rtol=2e-2), \
            float(jnp.max(jnp.abs(a - r)))

    # Also exercise the with_residuals=False branch of the decoder block.
    logits2, attns2 = transformer_lm_forward(inputs, fast, n_heads, False)
    logits2 = jax.block_until_ready(logits2)
    ref_logits2, ref_attns2 = _ref_forward(inputs, params, n_heads, False)
    assert jnp.allclose(logits2, ref_logits2, atol=2e-2, rtol=2e-2), \
        float(jnp.max(jnp.abs(logits2 - ref_logits2)))

    print("KERNEL_OK")
</pallas_src>

<mosaic_0001>
module attributes {stable_mosaic.version = 11 : i64} {
  func.func @_ln_qkv_kernel(%arg0: i32, %arg1: i32, %arg2: memref<1x8x32xf32, #tpu.memory_space<vmem>>, %arg3: memref<1x32xf32, #tpu.memory_space<vmem>>, %arg4: memref<1x32xf32, #tpu.memory_space<vmem>>, %arg5: memref<32x96xbf16, #tpu.memory_space<vmem>>, %arg6: memref<1x96xf32, #tpu.memory_space<vmem>>, %arg7: memref<1x8x32xf32, #tpu.memory_space<vmem>>, %arg8: memref<1x4x8x8xbf16, #tpu.memory_space<vmem>>, %arg9: memref<1x4x8x8xbf16, #tpu.memory_space<vmem>>, %arg10: memref<1x4x8x8xbf16, #tpu.memory_space<vmem>>) attributes {dimension_semantics = [#tpu.dimension_semantics<parallel>, #tpu.dimension_semantics<parallel>], iteration_bounds = array<i64: 2, 1>, scalar_prefetch = 0 : i64, scratch_operands = 0 : i64, tpu.core_type = #tpu.core_type<tc>, window_params = [{transform_indices = @transform_0, window_bounds = array<i64: 1, 8, 32>}, {pipeline_mode = #tpu.pipeline_mode<synchronous>, transform_indices = @transform_1, window_bounds = array<i64: 1, 32>}, {pipeline_mode = #tpu.pipeline_mode<synchronous>, transform_indices = @transform_2, window_bounds = array<i64: 1, 32>}, {pipeline_mode = #tpu.pipeline_mode<synchronous>, transform_indices = @transform_3, window_bounds = array<i64: 32, 96>}, {pipeline_mode = #tpu.pipeline_mode<synchronous>, transform_indices = @transform_4, window_bounds = array<i64: 1, 96>}, {transform_indices = @transform_5, window_bounds = array<i64: 1, 8, 32>}, {transform_indices = @transform_6, window_bounds = array<i64: 1, 4, 8, 8>}, {transform_indices = @transform_7, window_bounds = array<i64: 1, 4, 8, 8>}, {transform_indices = @transform_8, window_bounds = array<i64: 1, 4, 8, 8>}]} {
    %c0 = arith.constant 0 : index
    %c0_0 = arith.constant 0 : index
    %c0_1 = arith.constant 0 : index
    %0 = vector.load %arg2[%c0, %c0_0, %c0_1] : memref<1x8x32xf32, #tpu.memory_space<vmem>>, vector<1x8x32xf32>
    %1 = vector.shape_cast %0 : vector<1x8x32xf32> to vector<8x32xf32>
    %c0_2 = arith.constant 0 : index
    %c0_3 = arith.constant 0 : index
    %2 = vector.load %arg3[%c0_2, %c0_3] : memref<1x32xf32, #tpu.memory_space<vmem>>, vector<1x32xf32>
    %c0_4 = arith.constant 0 : index
    %c0_5 = arith.constant 0 : index
    %3 = vector.load %arg4[%c0_4, %c0_5] : memref<1x32xf32, #tpu.memory_space<vmem>>, vector<1x32xf32>
    %cst = arith.constant dense<0.000000e+00> : vector<8xf32>
    %4 = vector.multi_reduction <add>, %1, %cst [1] : vector<8x32xf32> to vector<8xf32>
    %5 = vector.shape_cast %4 : vector<8xf32> to vector<8x1xf32>
    %cst_6 = arith.constant 3.200000e+01 : f32
    %6 = vector.broadcast %cst_6 : f32 to vector<8x1xf32>
    %7 = arith.divf %5, %6 : vector<8x1xf32>
    %8 = vector.broadcast %7 : vector<8x1xf32> to vector<8x32xf32>
    %9 = arith.subf %1, %8 : vector<8x32xf32>
    %10 = arith.mulf %9, %9 : vector<8x32xf32>
    %cst_7 = arith.constant dense<0.000000e+00> : vector<8xf32>
    %11 = vector.multi_reduction <add>, %10, %cst_7 [1] : vector<8x32xf32> to vector<8xf32>
    %12 = vector.shape_cast %11 : vector<8xf32> to vector<8x1xf32>
    %cst_8 = arith.constant 3.200000e+01 : f32
    %13 = vector.broadcast %cst_8 : f32 to vector<8x1xf32>
    %14 = arith.divf %12, %13 : vector<8x1xf32>
    %15 = vector.broadcast %7 : vector<8x1xf32> to vector<8x32xf32>
    %16 = arith.subf %1, %15 : vector<8x32xf32>
    %cst_9 = arith.constant 9.99999974E-6 : f32
    %17 = vector.broadcast %cst_9 : f32 to vector<8x1xf32>
    %18 = arith.addf %14, %17 : vector<8x1xf32>
    %19 = math.rsqrt %18 : vector<8x1xf32>
    %20 = vector.broadcast %19 : vector<8x1xf32> to vector<8x32xf32>
    %21 = arith.mulf %16, %20 : vector<8x32xf32>
    %22 = vector.broadcast %2 : vector<1x32xf32> to vector<8x32xf32>
    %23 = arith.mulf %21, %22 : vector<8x32xf32>
    %24 = vector.broadcast %3 : vector<1x32xf32> to vector<8x32xf32>
    %25 = arith.addf %23, %24 : vector<8x32xf32>
    %c0_10 = arith.constant 0 : index
    %c0_11 = arith.constant 0 : index
    %c0_12 = arith.constant 0 : index
    %26 = vector.load %arg7[%c0_10, %c0_11, %c0_12] : memref<1x8x32xf32, #tpu.memory_space<vmem>>, vector<1x8x32xf32>
    %27 = vector.shape_cast %26 : vector<1x8x32xf32> to vector<8x32xf32>
    %28 = vector.shape_cast %25 : vector<8x32xf32> to vector<1x8x32xf32>
    tpu.vector_store %arg7[%c0_10, %c0_11, %c0_12], %28 {strides = array<i32>} : memref<1x8x32xf32, #tpu.memory_space<vmem>>, vector<1x8x32xf32>,
    %29 = arith.truncf %25 : vector<8x32xf32> to vector<8x32xbf16>
    %c0_13 = arith.constant 0 : index
    %c0_14 = arith.constant 0 : index
    %30 = vector.load %arg5[%c0_13, %c0_14] : memref<32x96xbf16, #tpu.memory_space<vmem>>, vector<32x96xbf16>
    %cst_15 = arith.constant dense<0.000000e+00> : vector<8x96xf32>
    %31 = tpu.matmul %29, %30, %cst_15 {dimension_numbers = #tpu.dot_dimension_numbers<[1], [0], [0], [1], [0, 0, 1, 1], [], []>} : vector<8x32xbf16>, vector<32x96xbf16>, vector<8x96xf32> -> vector<8x96xf32>
    %c0_16 = arith.constant 0 : index
    %c0_17 = arith.constant 0 : index
    %32 = vector.load %arg6[%c0_16, %c0_17] : memref<1x96xf32, #tpu.memory_space<vmem>>, vector<1x96xf32>
    %33 = vector.broadcast %32 : vector<1x96xf32> to vector<8x96xf32>
    %34 = arith.addf %31, %33 : vector<8x96xf32>
    %35 = vector.extract_strided_slice %34 {offsets = [0, 0], sizes = [8, 32], strides = [1, 1]} : vector<8x96xf32> to vector<8x32xf32>
    %36 = vector.shape_cast %35 : vector<8x32xf32> to vector<8x4x8xf32>
    %37 = tpu.transpose %36, [1, 0, 2] : vector<8x4x8xf32> -> vector<4x8x8xf32>
    %38 = arith.truncf %37 : vector<4x8x8xf32> to vector<4x8x8xbf16>
    %c0_18 = arith.constant 0 : index
    %c0_19 = arith.constant 0 : index
    %c0_20 = arith.constant 0 : index
    %c0_21 = arith.constant 0 : index
    %39 = vector.load %arg8[%c0_18, %c0_19, %c0_20, %c0_21] : memref<1x4x8x8xbf16, #tpu.memory_space<vmem>>, vector<1x4x8x8xbf16>
    %40 = vector.shape_cast %39 : vector<1x4x8x8xbf16> to vector<4x8x8xbf16>
    %41 = vector.shape_cast %38 : vector<4x8x8xbf16> to vector<1x4x8x8xbf16>
    tpu.vector_store %arg8[%c0_18, %c0_19, %c0_20, %c0_21], %41 {strides = array<i32>} : memref<1x4x8x8xbf16, #tpu.memory_space<vmem>>, vector<1x4x8x8xbf16>,
    %42 = vector.extract_strided_slice %34 {offsets = [0, 32], sizes = [8, 32], strides = [1, 1]} : vector<8x96xf32> to vector<8x32xf32>
    %43 = vector.shape_cast %42 : vector<8x32xf32> to vector<8x4x8xf32>
    %44 = tpu.transpose %43, [1, 0, 2] : vector<8x4x8xf32> -> vector<4x8x8xf32>
    %45 = arith.truncf %44 : vector<4x8x8xf32> to vector<4x8x8xbf16>
    %c0_22 = arith.constant 0 : index
    %c0_23 = arith.constant 0 : index
    %c0_24 = arith.constant 0 : index
    %c0_25 = arith.constant 0 : index
    %46 = vector.load %arg9[%c0_22, %c0_23, %c0_24, %c0_25] : memref<1x4x8x8xbf16, #tpu.memory_space<vmem>>, vector<1x4x8x8xbf16>
    %47 = vector.shape_cast %46 : vector<1x4x8x8xbf16> to vector<4x8x8xbf16>
    %48 = vector.shape_cast %45 : vector<4x8x8xbf16> to vector<1x4x8x8xbf16>
    tpu.vector_store %arg9[%c0_22, %c0_23, %c0_24, %c0_25], %48 {strides = array<i32>} : memref<1x4x8x8xbf16, #tpu.memory_space<vmem>>, vector<1x4x8x8xbf16>,
    %49 = vector.extract_strided_slice %34 {offsets = [0, 64], sizes = [8, 32], strides = [1, 1]} : vector<8x96xf32> to vector<8x32xf32>
    %50 = vector.shape_cast %49 : vector<8x32xf32> to vector<8x4x8xf32>
    %51 = tpu.transpose %50, [1, 0, 2] : vector<8x4x8xf32> -> vector<4x8x8xf32>
    %52 = arith.truncf %51 : vector<4x8x8xf32> to vector<4x8x8xbf16>
    %c0_26 = arith.constant 0 : index
    %c0_27 = arith.constant 0 : index
    %c0_28 = arith.constant 0 : index
    %c0_29 = arith.constant 0 : index
    %53 = vector.load %arg10[%c0_26, %c0_27, %c0_28, %c0_29] : memref<1x4x8x8xbf16, #tpu.memory_space<vmem>>, vector<1x4x8x8xbf16>
    %54 = vector.shape_cast %53 : vector<1x4x8x8xbf16> to vector<4x8x8xbf16>
    %55 = vector.shape_cast %52 : vector<4x8x8xbf16> to vector<1x4x8x8xbf16>
    tpu.vector_store %arg10[%c0_26, %c0_27, %c0_28, %c0_29], %55 {strides = array<i32>} : memref<1x4x8x8xbf16, #tpu.memory_space<vmem>>, vector<1x4x8x8xbf16>,
    return
  }
  func.func @transform_0(%arg0: i32, %arg1: i32) -> (i32, i32, i32) {
    %c0_i32 = arith.constant 0 : i32
    %c0_i32_0 = arith.constant 0 : i32
    return %arg0, %arg1, %c0_i32 : i32, i32, i32
  }
  func.func @transform_1(%arg0: i32, %arg1: i32) -> (i32, i32) {
    %c0_i32 = arith.constant 0 : i32
    %c0_i32_0 = arith.constant 0 : i32
    %c0_i32_1 = arith.constant 0 : i32
    return %c0_i32, %c0_i32_0 : i32, i32
  }
  func.func @transform_2(%arg0: i32, %arg1: i32) -> (i32, i32) {
    %c0_i32 = arith.constant 0 : i32
    %c0_i32_0 = arith.constant 0 : i32
    %c0_i32_1 = arith.constant 0 : i32
    return %c0_i32, %c0_i32_0 : i32, i32
  }
  func.func @transform_3(%arg0: i32, %arg1: i32) -> (i32, i32) {
    %c0_i32 = arith.constant 0 : i32
    %c0_i32_0 = arith.constant 0 : i32
    %c0_i32_1 = arith.constant 0 : i32
    return %c0_i32, %c0_i32_0 : i32, i32
  }
  func.func @transform_4(%arg0: i32, %arg1: i32) -> (i32, i32) {
    %c0_i32 = arith.constant 0 : i32
    %c0_i32_0 = arith.constant 0 : i32
    %c0_i32_1 = arith.constant 0 : i32
    return %c0_i32, %c0_i32_0 : i32, i32
  }
  func.func @transform_5(%arg0: i32, %arg1: i32) -> (i32, i32, i32) {
    %c0_i32 = arith.constant 0 : i32
    %c0_i32_0 = arith.constant 0 : i32
    return %arg0, %arg1, %c0_i32 : i32, i32, i32
  }
  func.func @transform_6(%arg0: i32, %arg1: i32) -> (i32, i32, i32, i32) {
    %c0_i32 = arith.constant 0 : i32
    %c0_i32_0 = arith.constant 0 : i32
    %c0_i32_1 = arith.constant 0 : i32
    return %arg0, %c0_i32, %arg1, %c0_i32_0 : i32, i32, i32, i32
  }
  func.func @transform_7(%arg0: i32, %arg1: i32) -> (i32, i32, i32, i32) {
    %c0_i32 = arith.constant 0 : i32
    %c0_i32_0 = arith.constant 0 : i32
    %c0_i32_1 = arith.constant 0 : i32
    return %arg0, %c0_i32, %arg1, %c0_i32_0 : i32, i32, i32, i32
  }
  func.func @transform_8(%arg0: i32, %arg1: i32) -> (i32, i32, i32, i32) {
    %c0_i32 = arith.constant 0 : i32
    %c0_i32_0 = arith.constant 0 : i32
    %c0_i32_1 = arith.constant 0 : i32
    return %arg0, %c0_i32, %arg1, %c0_i32_0 : i32, i32, i32, i32
  }
}

</mosaic_0001>

<bundles_post_ra>
// kernel: tpu_custom_call.1
= control target key start
LH: loop header
LB: loop body
LE: loop exit
PB: predicated region body
PF: predicated region fallthrough
CT: control target
= control target key end

     0   :  { %s2097_s0 = inlined_call_operand.hbm [shape: f32[2,8,32], index: 0, kind: input, shape index: {}]   ;;  %s2098_s1 = inlined_call_operand.vmem [shape: f32[1,32], index: 1, kind: input, shape index: {}]   ;;  %s2099_s2 = inlined_call_operand.vmem [shape: f32[1,32], index: 2, kind: input, shape index: {}]   ;;  %s2100_s3 = inlined_call_operand.hbm [shape: bf16[32,96], index: 3, kind: input, shape index: {}]   ;;  %s2101_s4 = inlined_call_operand.vmem [shape: f32[1,96], index: 4, kind: input, shape index: {}]   ;;  %s2102_s5 = inlined_call_operand.hbm [shape: f32[2,8,32], index: 5, kind: output, shape index: {0}]   ;;  %s2103_s6 = inlined_call_operand.hbm [shape: bf16[2,4,8,8], index: 6, kind: output, shape index: {1}]   ;;  %s2104_s7 = inlined_call_operand.hbm [shape: bf16[2,4,8,8], index: 7, kind: output, shape index: {2}]   ;;  %s2105_s8 = inlined_call_operand.hbm [shape: bf16[2,4,8,8], index: 8, kind: output, shape index: {3}]  }
   0x1   :  { %2114 = sst [smem:[#allocation20_spill]] %s2097_s0 }
   0x2   :  { %2115 = sst [smem:[#allocation21_spill]] %s2098_s1 }
   0x3   :  { %2116 = sst [smem:[#allocation22_spill]] %s2099_s2 }
   0x4   :  { %2117 = sst [smem:[#allocation23_spill]] %s2100_s3 }
   0x5   :  { %2118 = sst [smem:[#allocation24_spill]] %s2101_s4 }
   0x6   :  { %14 = vsyncpa [#allocation3], 0 }
   0x7   :  { %16 = vsyncpa [#allocation3 + $0x1], 0 }
   0x8   :  { %17 = vsyncpa [#allocation6], 0 }
   0x9   :  { %18 = vsyncpa [#allocation4], 0 }
   0xa   :  { %20 = vsyncpa [#allocation4 + $0x1], 0 }
   0xb   :  { %21 = vsyncpa [#allocation9], 0 }
   0xc   :  { %23 = vsyncpa [#allocation9 + $0x1], 0 }
   0xd   :  { %24 = vsyncpa [#allocation12], 0 }
   0xe   :  { %26 = vsyncpa [#allocation12 + $0x1], 0  ;;  %s1683_s27 = smov 0   ;;  %s1685_s28 = smov 0  }
   0xf   :  { %s1687_s29 = smov 0   ;;  %s1689_s30 = smov 0  }
  0x10   :  { %s1691_s9 = smov 0   ;;  %s1693_s10 = smov 0  }
  0x11 LB: > { %s1714_s11 = sadd.s32 4294967295, %s1618_s10   ;;  %s2109_s12 = sadd.s32 4294967294, %s1618_s10   ;;  %s1618_s10 = sphi %s1693_s10, %s32_s10   ;;  %s1614_s9 = sphi %s1691_s9, %s2148_s9   ;;  %s1610_s30 = sphi %s1689_s30, %s2147_s30   ;;  %s1606_s29 = sphi %s1687_s29, %s2146_s29   ;;  %s1602_s28 = sphi %s1685_s28, %s2145_s28   ;;  %s1598_s27 = sphi %s1683_s27, %s2144_s27  }
  0x12   : > { %p66_p0 = scmp.ne.s32.totalorder %s1602_s28, %s1598_s27  ;;  %p2106_p1 = scmp.eq.s32.totalorder %s1714_s11, 0 }
  0x13   : > { %p182_p3 = scmp.eq.s32.totalorder %s2109_s12, 1  ;;  %p1227_p5 = scmp.ge.s32.totalorder %s1618_s10, 1 }
  0x14   : > { %p1725_p4 = por %p2106_p1, %p66_p0  ;;  %p273_p7 = scmp.lt.s32.totalorder %s1618_s10, 3 }
  0x15   : > { %p1730_p6 = por %p182_p3, %p66_p0  ;;  %s1620_s16 = smov [#allocation5]  }
  0x16   : > { %s2119_s13 = scalar_select %p1725_p4, 1, 0 }
  0x17   : > { %s2120_s14 = scalar_select %p1730_p6, 1, 0 }
  0x18   : > { %p1735_p8 = pnand %p1227_p5, %p273_p7  ;;  %s291_s17 = sshll.u32 %s1620_s16, 4  ;;  %s292_s17 = int_to_ptr.vmem [resolvable:$true] %s291_s17 }
  0x19   : > { %2121 = sst [smem:[#allocation18_spill]] %s2120_s14  ;;  %s44_s19 = sadd.s32 1, %s1614_s9 }
  0x1a   : > { %s2122_s15 = scalar_select %p1735_p8, 1, 0 }
  0x1b   : > { %p1292_p9 = pneg %p1735_p8  ;;  %s2124_s3 = sld [smem:[#allocation23_spill]] }
  0x1d   : > { %p1744_p11 = pnand %p1292_p9, %p2106_p1 }
  0x1f   : > { %p1384_p13 = pneg %p1744_p11 }
  0x21   : > { %s1382_s22 = scalar_lea.hbm %s2124_s3, 256 }
  0x22   : > { %p1383_p12 = scmp.ne.s32.totalorder %s2124_s3, %s1382_s22  ;;  %p1389_p5 = scmp.lt.u32.totalorder %s1382_s22, %s2124_s3 }
  0x24   : > { %p1385_p0 = pnand %p1384_p13, %p1383_p12 }
  0x26   : > { %p1386_p3 = pneg %p1385_p0 }
  0x28   : > { %p1391_p7 = pnand %p1389_p5, %p1386_p3 }
  0x2a   : > { %1394 = shalt.err (!%p1391_p7)
}
  0x2b   : > { %s1395_s16 = scalar_lea.vmem %s292_s17, 256  ;;  %p1403_p2 = scmp.lt.s32.totalorder %s292_s17, %s292_s17 }
  0x2c   : > { %p1396_p9 = scmp.ne.s32.totalorder %s292_s17, %s1395_s16  ;;  %p1404_p6 = scmp.lt.s32.totalorder %s1395_s16, %s1395_s16 }
  0x2e   : > { %p1398_p10 = pnand %p1396_p9, %p1384_p13  ;;  %p1405_p4 = por %p1404_p6, %p1403_p2 }
  0x30   : > { %p1399_p1 = pneg %p1398_p10 }
  0x32   : > { %p1406_p8 = pnand %p1405_p4, %p1399_p1 }
  0x34   : > { %1409 = shalt.err (!%p1406_p8)
}
  0x35   : > { %s1621_s20 = smov 64   ;;  %s1622_s21 = smov 4  }
  0x36   : > { %1295 = dma.hbm_to_vmem [thread:$0]  (!%p1744_p11), %s2124_s3, 256, %s292_s17, [#allocation6], %s1621_s20, %s1621_s20, %s1622_s21  }
  0x37   : > { %p46_p1 = scmp.ge.s32.totalorder %s44_s19, 2  ;;  %s53_s24 = sadd.s32 1, %s1606_s29 }
  0x38   : > { %p60_p2 = scmp.ne.s32.totalorder %s1606_s29, %s1602_s28  ;;  %p61_p4 = scmp.eq.s32.totalorder %s1618_s10, 0 }
  0x39   : > { %s2150_s19 = smov (%p46_p1, %s44_s19), 0  ;;  %p2127_p8 = scmp.eq.s32.totalorder %s1714_s11, 1 }
  0x3a   : > { %2125 = sst [smem:[#allocation19_spill]] %s2150_s19  ;;  %p1771_p6 = por %p61_p4, %p60_p2 }
  0x3b   : > { %p1777_p10 = por %p2127_p8, %p60_p2  ;;  %s48_s18 = ssub.s32 %s1614_s9, %s2150_s19 }
  0x3c   : > { %p1314_p12 = scmp.lt.s32.totalorder %s1618_s10, 2  ;;  %p51_p11 = scmp.eq.s32.totalorder %s48_s18, 0 }
  0x3d   : > { %s308_s17 = sand.u32 1, %s1606_s29   ;;  %s1231_s21 = sshll.u32 %s1614_s9, 7 }
  0x3e   : > { %s1230_s16 = sshll.u32 %s308_s17, 3  ;;  %s2129_s0 = sld [smem:[#allocation20_spill]] }
  0x3f   : > { %s1786_s20 = scalar_select %p51_p11, %s1606_s29, %s53_s24  }
  0x40   : > { %s312_s3 = scalar_lea.vmem [#allocation2], %s1230_s16  ;;  %p1798_p13 = pnand %p1314_p12, %p1771_p6 }
  0x41   : > { %s320_s14 = sshll.u32 %s312_s3, 4  ;;  %s309_s24 = scalar_lea.sflag [#allocation3], %s308_s17  ;;  %s1794_s14 = int_to_ptr.vmem [resolvable:$true] %s320_s14 }
  0x42   : > { %p1412_p3 = pneg %p1798_p13 }
  0x44   : > { %s1792_s12 = scalar_lea.hbm %s2129_s0, %s1231_s21  ;;  %s1415_s21 = scalar_lea.hbm %s2129_s0, 256 }
  0x45   : > { %s1410_s19 = scalar_lea.hbm %s1792_s12, 128  ;;  %p1416_p9 = scmp.lt.u32.totalorder %s1792_s12, %s2129_s0 }
  0x46   : > { %p1411_p0 = scmp.ne.s32.totalorder %s1792_s12, %s1410_s19  ;;  %p1417_p1 = scmp.lt.u32.totalorder %s1415_s21, %s1410_s19 }
  0x47   : > { %p1419_p4 = scmp.lt.u32.totalorder %s1410_s19, %s1792_s12 }
  0x48   : > { %p1413_p5 = pnand %p1412_p3, %p1411_p0  ;;  %p1418_p2 = por %p1417_p1, %p1416_p9 }
  0x4a   : > { %p1414_p7 = pneg %p1413_p5  ;;  %p1420_p6 = por %p1419_p4, %p1418_p2 }
  0x4c   : > { %p1421_p8 = pnand %p1420_p6, %p1414_p7 }
  0x4e   : > { %1424 = shalt.err (!%p1421_p8)
}
  0x4f   : > { %s1425_s17 = scalar_lea.vmem %s1794_s14, 128  ;;  %s1623_s23 = smov [#allocation2]  }
  0x50   : > { %p1426_p12 = scmp.ne.s32.totalorder %s1794_s14, %s1425_s17  ;;  %s1430_s16 = sshll.u32 %s1623_s23, 4  ;;  %s1431_s16 = int_to_ptr.vmem [resolvable:$false] %s1430_s16 }
  0x51   : > { %s1432_s3 = scalar_lea.vmem %s1431_s16, 256  ;;  %p1433_p5 = scmp.lt.s32.totalorder %s1794_s14, %s1431_s16 }
  0x52   : > { %p1428_p11 = pnand %p1426_p12, %p1412_p3  ;;  %p1434_p9 = scmp.lt.s32.totalorder %s1432_s3, %s1425_s17 }
  0x54   : > { %p1429_p0 = pneg %p1428_p11  ;;  %p1435_p1 = por %p1434_p9, %p1433_p5 }
  0x56   : > { %p1436_p2 = pnand %p1435_p1, %p1429_p0 }
  0x58   : > { %1439 = shalt.err (!%p1436_p2)
}
  0x59   : > { %1299 = dma.hbm_to_vmem [thread:$0]  (!%p1798_p13), %s1792_s12, 128, %s1794_s14, %s309_s24  }
  0x5a   : > { %p2131_p7 = scmp.ne.s32.totalorder %s2122_s15, 0 }
  0x5b   : > { %s1830_s19 = sand.u32 (!%p2131_p7), 1, %s1602_s28   ;;  %p2132_p3 = scmp.ne.s32.totalorder (!%p2131_p7), %s2119_s13, 0 }
  0x5c   : > { %329 = sbr.rel (%p2131_p7) target bundleno = 931 (0x3a3), region = 40  ;;  %s1233_s21 = sshll.u32 (!%p2131_p7), %s1830_s19, 3 }
  0x5d   : > { %s332_s25 = scalar_lea.sflag (!%p2131_p7), [#allocation3], %s1830_s19  ;;  %s335_s22 = scalar_lea.vmem (!%p2131_p7), [#allocation2], %s1233_s21 }
  0x63   : > { %1577 = dma.done.wait (%p2132_p3), %s332_s25, 128  }
  0x64   : > { %1579 = vsyncadd (%p2132_p3), %s332_s25, 4294967168  ;;  %p2133_p13 = scmp.eq.s32.totalorder %s1714_s11, 0 }
  0x66   : > { %1581 = dma.done.wait (%p2133_p13), [#allocation6], 256   ;;  %p2134_p4 = pmov %p2133_p13 }
  0x67   : > { %vm391_vm0 = vcmask 261120   ;;  %v388_v0 = vld [vmem:[%s335_s22] sm:$0xff]  ;;  %v1378_v7 = vld [vmem:[#allocation5] sm:$0xff]   ;;  %v1624_v8 = vmov 0.0   ;;  %v1379_v9 = vld [vmem:[#allocation5 + $0x8] sm:$0xff]   ;;  %vm1625_vm1 = vmmov 0   ;;  %v503_v28 = vlaneseq }
  0x68   : > { %1583 = vsyncadd (%p2134_p4), [#allocation6], 4294967040  ;;  %v392_v1 = vsel %vm391_vm0, %v388_v0, 0.0  ;;  %1270 = vmatprep.subr.bf16.mxu0 %v1624_v8  ;;  %1274 = vmatprep.mubr.msk.bf16.mxu0 %vm1625_vm1, %v1624_v8  ;;  %s2135_s1 = sld [smem:[#allocation21_spill]]  ;;  %s2136_s2 = sld [smem:[#allocation22_spill]]  ;;  %vm638_vm2 = vcmask 60416  }
  0x69   : > { %393 = vadd.xlane.f32.xlu0 %v392_v1  ;;  %1271 = vmatpush3.bf16.msra.mxu0 %v1378_v7  ;;  %s1854_s18 = scalar_lea.vmem [#allocation7], %s1233_s21  ;;  %s2137_s4 = sld [smem:[#allocation24_spill]]  ;;  %v1631_v26 = vmov 1983009808   ;;  %v1632_v29 = vmov 1934713408  }
  0x6a   : > { %1272 = vmatprep.subr.bf16.mxu0 %v1624_v8  ;;  %s1626_s23 = smov 104   ;;  %s1627_s16 = smov 120   ;;  %v501_v27 = vunpack.c.l.s4 %v1631_v26  ;;  %v533_v30 = vunpack.c.l.s4 %v1632_v29  ;;  %v504_v32 = vshrl.u32 %v503_v28, 7 }
  0x6b   : > { %s1628_s3 = smov 112   ;;  %s1629_s21 = smov 96  }
  0x6c   : > { %s2112_s25 = smov 64   ;;  %v502_v31 = vunpack.c.0.s8 %v501_v27  ;;  %v534_v35 = vunpack.c.0.s8 %v533_v30  ;;  %s1891_s22 = sshll.u32 %s1830_s19, 4 }
  0x6d   : > { %1273 = vmatpush3.bf16.msra.mxu0 %v1379_v9  ;;  %s960_s12 = sand.u32 1, %s1714_s11   ;;  %s1895_s13 = sshll.u32 %s1610_s30, 8 }
  0x6e   : > { %v1239_v14 = vld [vmem:[%s2135_s1] ss:$0 sm:$0xff]  ;;  %v1865_v36 = vsub.s32 %v502_v31, %v504_v32  ;;  %v1869_v42 = vsub.s32 %v534_v35, %v504_v32  ;;  %s1901_s24 = scalar_lea.hbm %s2103_s6, %s1895_s13  ;;  %s372_s17 = scalar_lea.vmem [#allocation8], %s1891_s22 }
  0x6f   : > { %v1240_v16 = vld [vmem:[%s2136_s2] ss:$0 sm:$0xff]  ;;  %s1910_s11 = scalar_lea.sflag [#allocation9], %s960_s12 }
  0x70   : > { %v1241_v20 = vld [vmem:[%s2137_s4] ss:$0 sm:$0xff] }
  0xf6   : > { %v394_v2 = vpop.xlane.xlu0 %393 }
  0xf7   : > { %v396_v3 = vmul.f32 0.03125, %v394_v2 }
  0xf9   : > { %v397_v4 = vsub.f32 %v388_v0, %v396_v3 }
  0xfb   : > { %v398_v5 = vmul.f32 %v397_v4, %v397_v4 }
  0xfd   : > { %v399_v6 = vsel %vm391_vm0, %v398_v5, 0.0 }
  0xfe   : > { %400 = vadd.xlane.f32.xlu0 %v399_v6 }
 0x18b   : > { %v401_v10 = vpop.xlane.xlu0 %400 }
 0x18c   : > { %v402_v11 = vmul.f32 0.03125, %v401_v10 }
 0x18e   : > { %v403_v12 = vadd.f32 1e-05, %v402_v11 }
 0x190   : > { %1380 = vrsqrt.f32 %v403_v12 }
 0x19a   : > { %v1381_v13 = vpop.eup %1380 }
 0x19b   : > { %v405_v15 = vmul.f32 %v1381_v13, %v397_v4 }
 0x19d   : > { %v412_v17 = vmul.f32 %v1239_v14, %v405_v15 }
 0x19f   : > { %v419_v18 = vadd.f32 %v1240_v16, %v412_v17 }
 0x1a1   : > { %v421_v19 = vpack.c.bf16 %v419_v18, %v419_v18  ;;  %420 = vst.msk [vmem:[%s1854_s18] sm:$0xff] %vm391_vm0, %v419_v18 }
 0x1a3   : > { %1275 = vmatmul.mubr.msk.bf16.vlgmr.msra.gmra.mrb[0].mxu0 %vm391_vm0, %v421_v19 }
 0x276   : > { %v482_v21 = vpop.f32.mrb[0].mxu0 }
 0x277   : > { %v483_v22 = vadd.f32 %v1241_v20, %v482_v21  ;;  %v1276_v23 = vpop.f32.mrb[1].mxu0 }
 0x278   : > { %v485_v24 = vpop.f32.mrb[2].mxu0 }
 0x279   : > { %495 = vrot.lane.b32.xlu0 %v483_v22, %s1626_s23  ;;  %489 = vrot.lane.b32.xlu1 %v483_v22, %s1627_s16  ;;  %v1277_v25 = vpop.f32.mrb[3].mxu0  ;;  %s999_s23 = sshll.u32 %s372_s17, 4  ;;  %s1908_s23 = int_to_ptr.vmem [resolvable:$true] %s999_s23 }
 0x27a   : > { %s1440_s16 = scalar_lea.vmem %s1908_s23, 256 }
 0x27b   : > { %p1441_p6 = scmp.ne.s32.totalorder %s1908_s23, %s1440_s16 }
 0x27d   : > { %492 = vrot.lane.b32.xlu1 %v483_v22, %s1628_s3  ;;  %p1442_p8 = pnand %p1441_p6, %p1777_p10  ;;  %s1633_s3 = smov [#allocation8]  }
 0x27f   : > { %p1443_p12 = pneg %p1442_p8 }
 0x281   : > { %643 = vrot.lane.b32.xlu1 %v483_v22, %s1629_s21 }
 0x285   : > { %799 = vrot.lane.b32.xlu1 %v483_v22, %s2112_s25 }
 0x2eb   : > { %v496_v33 = vpop.permute.xlu0 %495  ;;  %v490_v34 = vpop.permute.xlu1 %489 }
 0x2ec   : > { %645 = vrot.lane.b32.xlu1 %v490_v34, %s1629_s21  ;;  %v514_v37 = vcombine.low %v490_v34, %v496_v33  ;;  %v515_v38 = vcombine.high %v490_v34, %v496_v33 }
 0x2ee   : > { %v522_v43 = vrot.slane %v514_v37, %v1865_v36  ;;  %v529_v44 = vrot.slane %v515_v38, %v1865_v36 }
 0x2ef   : > { %v493_v39 = vpop.permute.xlu1 %492 }
 0x2f0   : > { %v498_v40 = vcombine.low %v483_v22, %v493_v39  ;;  %v499_v41 = vcombine.high %v483_v22, %v493_v39  ;;  %803 = vrot.lane.b32.xlu0 %v493_v39, %s2112_s25  ;;  %647 = vrot.lane.b32.xlu1 %v493_v39, %s1629_s21 }
 0x2f2   : > { %v506_v45 = vrot.slane %v498_v40, %v1865_v36  ;;  %v513_v46 = vrot.slane %v499_v41, %v1865_v36 }
 0x2f4   : > { %v530_v47 = vcombine.low %v506_v45, %v522_v43  ;;  %v531_v48 = vcombine.high %v506_v45, %v522_v43  ;;  %v546_v49 = vcombine.low %v513_v46, %v529_v44  ;;  %v547_v50 = vcombine.high %v513_v46, %v529_v44  ;;  %649 = vrot.lane.b32.xlu1 %v496_v33, %s1629_s21  ;;  %s1444_s21 = sshll.u32 %s1633_s3, 4  ;;  %s1445_s21 = int_to_ptr.vmem [resolvable:$false] %s1444_s21 }
 0x2f5   : > { %s1446_s14 = scalar_lea.vmem %s1445_s21, 512  ;;  %p1447_p11 = scmp.lt.s32.totalorder %s1908_s23, %s1445_s21 }
 0x2f6   : > { %v538_v51 = vrot.slane %v530_v47, %v1869_v42  ;;  %v545_v52 = vrot.slane %v531_v48, %v1869_v42  ;;  %v554_v53 = vrot.slane %v546_v49, %v1869_v42  ;;  %v561_v54 = vrot.slane %v547_v50, %v1869_v42  ;;  %p1448_p0 = scmp.lt.s32.totalorder %s1446_s14, %s1440_s16 }
 0x2f8   : > { %v566_v55 = vcombine.low %v538_v51, %v545_v52  ;;  %v1245_v56 = vcombine.high %v538_v51, %v545_v52  ;;  %v582_v57 = vcombine.low %v554_v53, %v561_v54  ;;  %v1246_v58 = vcombine.high %v554_v53, %v561_v54  ;;  %801 = vrot.lane.b32.xlu1 %v490_v34, %s2112_s25  ;;  %p1449_p5 = por %p1448_p0, %p1447_p11 }
 0x2fa   : > { %v573_v59 = vrot.slane %v566_v55, %v1865_v36  ;;  %v581_v60 = vrot.slane %v1245_v56, %v1865_v36  ;;  %v589_v61 = vrot.slane %v582_v57, %v1865_v36  ;;  %v597_v62 = vrot.slane %v1246_v58, %v1865_v36  ;;  %p1450_p9 = pnand %p1449_p5, %p1443_p12 }
 0x2fc   : > { %v598_v63 = vcombine.low %v573_v59, %v581_v60  ;;  %v599_v0 = vcombine.high %v573_v59, %v581_v60  ;;  %v614_v1 = vcombine.low %v589_v61, %v597_v62  ;;  %v615_v2 = vcombine.high %v589_v61, %v597_v62  ;;  %805 = vrot.lane.b32.xlu1 %v496_v33, %s2112_s25 }
 0x2fe   : > { %v606_v3 = vrot.slane %v598_v63, %v1869_v42  ;;  %v613_v4 = vrot.slane %v599_v0, %v1869_v42  ;;  %v622_v5 = vrot.slane %v614_v1, %v1869_v42  ;;  %v629_v6 = vrot.slane %v615_v2, %v1869_v42 }
 0x300   : > { %v630_v7 = vcombine.low %v606_v3, %v622_v5  ;;  %v631_v8 = vcombine.high %v606_v3, %v622_v5  ;;  %v632_v9 = vcombine.low %v613_v4, %v629_v6  ;;  %v633_v10 = vcombine.high %v613_v4, %v629_v6 }
 0x302   : > { %v634_v11 = vpack.c.bf16 %v630_v7, %v630_v7  ;;  %v635_v12 = vpack.c.bf16 %v631_v8, %v631_v8  ;;  %v636_v13 = vpack.c.bf16 %v632_v9, %v632_v9  ;;  %v637_v14 = vpack.c.bf16 %v633_v10, %v633_v10 }
 0x304   : > { %639 = vst.msk [vmem:[%s372_s17] sm:$0xf] %vm638_vm2, %v634_v11  ;;  %640 = vst.msk [vmem:[%s372_s17 + $0x4] sm:$0xf] %vm638_vm2, %v635_v12 }
 0x305   : > { %641 = vst.msk [vmem:[%s372_s17 + $0x8] sm:$0xf] %vm638_vm2, %v636_v13  ;;  %642 = vst.msk [vmem:[%s372_s17 + $0xc] sm:$0xf] %vm638_vm2, %v637_v14 }
 0x306   : > { %1453 = shalt.err (!%p1450_p9)
}
 0x307   : > { %s1454_s12 = scalar_lea.hbm %s1901_s24, 256  ;;  %s1458_s3 = scalar_lea.hbm %s2103_s6, 512 }
 0x308   : > { %p1455_p1 = scmp.ne.s32.totalorder %s1901_s24, %s1454_s12  ;;  %p1459_p3 = scmp.lt.u32.totalorder %s1901_s24, %s2103_s6 }
 0x309   : > { %p1460_p13 = scmp.lt.u32.totalorder %s1458_s3, %s1454_s12  ;;  %p1462_p6 = scmp.lt.u32.totalorder %s1454_s12, %s1901_s24 }
 0x30a   : > { %p1456_p2 = pnand %p1455_p1, %p1777_p10 }
 0x30b   : > { %p1461_p4 = por %p1460_p13, %p1459_p3 }
 0x30c   : > { %p1457_p7 = pneg %p1456_p2 }
 0x30d   : > { %p1463_p8 = por %p1462_p6, %p1461_p4 }
 0x30f   : > { %p1464_p12 = pnand %p1463_p8, %p1457_p7 }
 0x311   : > { %1467 = shalt.err (!%p1464_p12)
}
 0x312   : > { %s1634_s16 = smov 4   ;;  %s2138_s14 = smov 64  }
 0x313   : > { %1285 = dma.vmem_to_hbm [thread:$0]  (%p1777_p10), %s1908_s23, 256, %s1901_s24, %s1910_s11, %s2138_s14, %s2138_s14, %s1634_s16  }
 0x314   : > { %s1255_s25 = sshll.u32 %s1610_s30, 7  ;;  %s985_s3 = sshll.u32 %s1854_s18, 4  ;;  %s986_s3 = int_to_ptr.vmem [resolvable:$true] %s985_s3 }
 0x315   : > { %s1941_s17 = scalar_lea.hbm %s2102_s5, %s1255_s25  ;;  %s956_s21 = scalar_lea.sflag [#allocation4], %s1830_s19 }
 0x316   : > { %s1468_s0 = scalar_lea.vmem %s986_s3, 128  ;;  %s1635_s1 = smov [#allocation7]  }
 0x317   : > { %p1469_p11 = scmp.ne.s32.totalorder %s986_s3, %s1468_s0  ;;  %s1472_s2 = sshll.u32 %s1635_s1, 4  ;;  %s1473_s2 = int_to_ptr.vmem [resolvable:$false] %s1472_s2 }
 0x318   : > { %s1474_s4 = scalar_lea.vmem %s1473_s2, 256  ;;  %p1475_p9 = scmp.lt.s32.totalorder %s986_s3, %s1473_s2 }
 0x319   : > { %p1470_p0 = pnand %p1469_p11, %p1777_p10  ;;  %p1476_p1 = scmp.lt.s32.totalorder %s1474_s4, %s1468_s0 }
 0x31b   : > { %p1471_p5 = pneg %p1470_p0  ;;  %p1477_p2 = por %p1476_p1, %p1475_p9 }
 0x31d   : > { %p1478_p7 = pnand %p1477_p2, %p1471_p5 }
 0x31f   : > { %1481 = shalt.err (!%p1478_p7)
}
 0x320   : > { %s1482_s30 = scalar_lea.hbm %s1941_s17, 128  ;;  %s1486_s1 = scalar_lea.hbm %s2102_s5, 256 }
 0x321   : > { %p1483_p3 = scmp.ne.s32.totalorder %s1941_s17, %s1482_s30  ;;  %p1487_p6 = scmp.lt.u32.totalorder %s1941_s17, %s2102_s5 }
 0x322   : > { %p1488_p8 = scmp.lt.u32.totalorder %s1486_s1, %s1482_s30  ;;  %p1490_p11 = scmp.lt.u32.totalorder %s1482_s30, %s1941_s17 }
 0x323   : > { %p1484_p13 = pnand %p1483_p3, %p1777_p10 }
 0x324   : > { %p1489_p12 = por %p1488_p8, %p1487_p6 }
 0x325   : > { %p1485_p4 = pneg %p1484_p13 }
 0x326   : > { %p1491_p0 = por %p1490_p11, %p1489_p12 }
 0x328   : > { %p1492_p5 = pnand %p1491_p0, %p1485_p4 }
 0x32a   : > { %1495 = shalt.err (!%p1492_p5)
}
 0x32b   : > { %1284 = dma.vmem_to_hbm [thread:$0]  (%p1777_p10), %s986_s3, 128, %s1941_s17, %s956_s21   ;;  %v644_v15 = vpop.permute.xlu1 %643 }
 0x32c   : > { %s379_s0 = scalar_lea.vmem [#allocation10], %s1891_s22  ;;  %s1991_s12 = scalar_lea.hbm %s2104_s7, %s1895_s13 }
 0x32d   : > { %s1016_s4 = sshll.u32 %s379_s0, 4  ;;  %s1636_s3 = smov [#allocation10]   ;;  %s1993_s4 = int_to_ptr.vmem [resolvable:$true] %s1016_s4 }
 0x32e   : > { %s1496_s17 = scalar_lea.vmem %s1993_s4, 256  ;;  %s1500_s21 = sshll.u32 %s1636_s3, 4  ;;  %s1501_s21 = int_to_ptr.vmem [resolvable:$false] %s1500_s21 }
 0x32f   : > { %v800_v16 = vpop.permute.xlu1 %799  ;;  %p1497_p9 = scmp.ne.s32.totalorder %s1993_s4, %s1496_s17  ;;  %s1502_s30 = scalar_lea.vmem %s1501_s21, 512 }
 0x330   : > { %p1503_p7 = scmp.lt.s32.totalorder %s1993_s4, %s1501_s21  ;;  %p1504_p3 = scmp.lt.s32.totalorder %s1502_s30, %s1496_s17 }
 0x331   : > { %p1498_p1 = pnand %p1497_p9, %p1777_p10 }
 0x332   : > { %p1505_p13 = por %p1504_p3, %p1503_p7 }
 0x333   : > { %p1499_p2 = pneg %p1498_p1 }
 0x335   : > { %p1506_p4 = pnand %p1505_p13, %p1499_p2 }
 0x35e   : > { %v646_v17 = vpop.permute.xlu1 %645 }
 0x362   : > { %v648_v18 = vpop.permute.xlu1 %647  ;;  %v804_v29 = vpop.permute.xlu0 %803 }
 0x363   : > { %v655_v19 = vcombine.low %v644_v15, %v648_v18  ;;  %v656_v20 = vcombine.high %v644_v15, %v648_v18  ;;  %v811_v39 = vcombine.low %v800_v16, %v804_v29  ;;  %v812_v40 = vcombine.high %v800_v16, %v804_v29 }
 0x365   : > { %v663_v24 = vrot.slane %v655_v19, %v1865_v36  ;;  %v670_v25 = vrot.slane %v656_v20, %v1865_v36  ;;  %v819_v53 = vrot.slane %v811_v39, %v1865_v36  ;;  %v826_v54 = vrot.slane %v812_v40, %v1865_v36 }
 0x366   : > { %v650_v21 = vpop.permute.xlu1 %649 }
 0x367   : > { %v671_v22 = vcombine.low %v646_v17, %v650_v21  ;;  %v672_v23 = vcombine.high %v646_v17, %v650_v21 }
 0x369   : > { %v679_v26 = vrot.slane %v671_v22, %v1865_v36  ;;  %v686_v27 = vrot.slane %v672_v23, %v1865_v36 }
 0x36a   : > { %v802_v28 = vpop.permute.xlu1 %801 }
 0x36b   : > { %v687_v30 = vcombine.low %v663_v24, %v679_v26  ;;  %v688_v31 = vcombine.high %v663_v24, %v679_v26  ;;  %v703_v32 = vcombine.low %v670_v25, %v686_v27  ;;  %v704_v33 = vcombine.high %v670_v25, %v686_v27 }
 0x36d   : > { %v695_v34 = vrot.slane %v687_v30, %v1869_v42  ;;  %v702_v35 = vrot.slane %v688_v31, %v1869_v42  ;;  %v711_v37 = vrot.slane %v703_v32, %v1869_v42  ;;  %v718_v38 = vrot.slane %v704_v33, %v1869_v42 }
 0x36e   : > { %v806_v41 = vpop.permute.xlu1 %805 }
 0x36f   : > { %v723_v43 = vcombine.low %v695_v34, %v702_v35  ;;  %v1247_v44 = vcombine.high %v695_v34, %v702_v35  ;;  %v739_v45 = vcombine.low %v711_v37, %v718_v38  ;;  %v1248_v46 = vcombine.high %v711_v37, %v718_v38 }
 0x370   : > { %v827_v47 = vcombine.low %v802_v28, %v806_v41  ;;  %v828_v48 = vcombine.high %v802_v28, %v806_v41 }
 0x371   : > { %v730_v49 = vrot.slane %v723_v43, %v1865_v36  ;;  %v738_v50 = vrot.slane %v1247_v44, %v1865_v36  ;;  %v746_v51 = vrot.slane %v739_v45, %v1865_v36  ;;  %v754_v52 = vrot.slane %v1248_v46, %v1865_v36 }
 0x372   : > { %v835_v55 = vrot.slane %v827_v47, %v1865_v36  ;;  %v842_v56 = vrot.slane %v828_v48, %v1865_v36 }
 0x373   : > { %v755_v57 = vcombine.low %v730_v49, %v738_v50  ;;  %v756_v58 = vcombine.high %v730_v49, %v738_v50  ;;  %v771_v59 = vcombine.low %v746_v51, %v754_v52  ;;  %v772_v60 = vcombine.high %v746_v51, %v754_v52 }
 0x374   : > { %v843_v61 = vcombine.low %v819_v53, %v835_v55  ;;  %v844_v62 = vcombine.high %v819_v53, %v835_v55  ;;  %v859_v63 = vcombine.low %v826_v54, %v842_v56  ;;  %v860_v0 = vcombine.high %v826_v54, %v842_v56 }
 0x375   : > { %v763_v1 = vrot.slane %v755_v57, %v1869_v42  ;;  %v770_v2 = vrot.slane %v756_v58, %v1869_v42  ;;  %v779_v3 = vrot.slane %v771_v59, %v1869_v42  ;;  %v786_v4 = vrot.slane %v772_v60, %v1869_v42 }
 0x376   : > { %v851_v5 = vrot.slane %v843_v61, %v1869_v42  ;;  %v858_v6 = vrot.slane %v844_v62, %v1869_v42  ;;  %v867_v7 = vrot.slane %v859_v63, %v1869_v42  ;;  %v874_v8 = vrot.slane %v860_v0, %v1869_v42 }
 0x377   : > { %v787_v9 = vcombine.low %v763_v1, %v779_v3  ;;  %v788_v10 = vcombine.high %v763_v1, %v779_v3  ;;  %v789_v11 = vcombine.low %v770_v2, %v786_v4  ;;  %v790_v12 = vcombine.high %v770_v2, %v786_v4 }
 0x378   : > { %v879_v13 = vcombine.low %v851_v5, %v858_v6  ;;  %v1249_v14 = vcombine.high %v851_v5, %v858_v6  ;;  %v895_v15 = vcombine.low %v867_v7, %v874_v8  ;;  %v1250_v16 = vcombine.high %v867_v7, %v874_v8 }
 0x379   : > { %v791_v17 = vpack.c.bf16 %v787_v9, %v787_v9  ;;  %v792_v18 = vpack.c.bf16 %v788_v10, %v788_v10  ;;  %v793_v19 = vpack.c.bf16 %v789_v11, %v789_v11  ;;  %v794_v20 = vpack.c.bf16 %v790_v12, %v790_v12 }
 0x37a   : > { %v886_v21 = vrot.slane %v879_v13, %v1865_v36  ;;  %v894_v22 = vrot.slane %v1249_v14, %v1865_v36  ;;  %v902_v23 = vrot.slane %v895_v15, %v1865_v36  ;;  %v910_v24 = vrot.slane %v1250_v16, %v1865_v36 }
 0x37b   : > { %795 = vst.msk [vmem:[%s379_s0] sm:$0xf] %vm638_vm2, %v791_v17  ;;  %796 = vst.msk [vmem:[%s379_s0 + $0x4] sm:$0xf] %vm638_vm2, %v792_v18 }
 0x37c   : > { %797 = vst.msk [vmem:[%s379_s0 + $0x8] sm:$0xf] %vm638_vm2, %v793_v19  ;;  %798 = vst.msk [vmem:[%s379_s0 + $0xc] sm:$0xf] %vm638_vm2, %v794_v20  ;;  %v911_v25 = vcombine.low %v886_v21, %v894_v22  ;;  %v912_v26 = vcombine.high %v886_v21, %v894_v22  ;;  %v927_v27 = vcombine.low %v902_v23, %v910_v24 }
 0x37d   : > { %v928_v28 = vcombine.high %v902_v23, %v910_v24 }
 0x37e   : > { %1509 = shalt.err (!%p1506_p4)
}
 0x37f   : > { %s1510_s18 = scalar_lea.hbm %s1991_s12, 256  ;;  %s1514_s23 = scalar_lea.hbm %s2104_s7, 512 }
 0x380   : > { %p1511_p6 = scmp.ne.s32.totalorder %s1991_s12, %s1510_s18  ;;  %p1515_p11 = scmp.lt.u32.totalorder %s1991_s12, %s2104_s7 }
 0x381   : > { %p1516_p0 = scmp.lt.u32.totalorder %s1514_s23, %s1510_s18  ;;  %p1518_p9 = scmp.lt.u32.totalorder %s1510_s18, %s1991_s12 }
 0x382   : > { %p1512_p8 = pnand %p1511_p6, %p1777_p10 }
 0x383   : > { %p1517_p5 = por %p1516_p0, %p1515_p11 }
 0x384   : > { %p1513_p12 = pneg %p1512_p8 }
 0x385   : > { %p1519_p1 = por %p1518_p9, %p1517_p5 }
 0x387   : > { %p1520_p2 = pnand %p1519_p1, %p1513_p12 }
 0x389   : > { %1523 = shalt.err (!%p1520_p2)
}
 0x38a   : > { %1286 = dma.vmem_to_hbm [thread:$0]  (%p1777_p10), %s1993_s4, 256, %s1991_s12, %s1910_s11, %s2138_s14, %s2138_s14, %s1634_s16   ;;  %v919_v36 = vrot.slane %v911_v25, %v1869_v42  ;;  %v926_v29 = vrot.slane %v912_v26, %v1869_v42  ;;  %v935_v30 = vrot.slane %v927_v27, %v1869_v42  ;;  %v942_v31 = vrot.slane %v928_v28, %v1869_v42 }
 0x38b   : > { %s386_s25 = scalar_lea.vmem [#allocation11], %s1891_s22  ;;  %s2037_s12 = scalar_lea.hbm %s2105_s8, %s1895_s13 }
 0x38c   : > { %s1033_s15 = sshll.u32 %s386_s25, 4  ;;  %v943_v32 = vcombine.low %v919_v36, %v935_v30  ;;  %v944_v33 = vcombine.high %v919_v36, %v935_v30  ;;  %v945_v34 = vcombine.low %v926_v29, %v942_v31  ;;  %v946_v35 = vcombine.high %v926_v29, %v942_v31  ;;  %s971_s22 = scalar_lea.sflag [#allocation12], %s1830_s19  ;;  %s2039_s15 = int_to_ptr.vmem [resolvable:$true] %s1033_s15 }
 0x38d   : > { %s1524_s17 = scalar_lea.vmem %s2039_s15, 256  ;;  %s1637_s13 = smov [#allocation11]  }
 0x38e   : > { %v947_v37 = vpack.c.bf16 %v943_v32, %v943_v32  ;;  %v948_v38 = vpack.c.bf16 %v944_v33, %v944_v33  ;;  %v949_v39 = vpack.c.bf16 %v945_v34, %v945_v34  ;;  %v950_v40 = vpack.c.bf16 %v946_v35, %v946_v35  ;;  %p1525_p7 = scmp.ne.s32.totalorder %s2039_s15, %s1524_s17  ;;  %s1528_s3 = sshll.u32 %s1637_s13, 4  ;;  %s1529_s3 = int_to_ptr.vmem [resolvable:$false] %s1528_s3 }
 0x38f   : > { %s1530_s21 = scalar_lea.vmem %s1529_s3, 512  ;;  %p1531_p4 = scmp.lt.s32.totalorder %s2039_s15, %s1529_s3 }
 0x390   : > { %951 = vst.msk [vmem:[%s386_s25] sm:$0xf] %vm638_vm2, %v947_v37  ;;  %952 = vst.msk [vmem:[%s386_s25 + $0x4] sm:$0xf] %vm638_vm2, %v948_v38  ;;  %p1526_p3 = pnand %p1525_p7, %p1777_p10  ;;  %p1532_p6 = scmp.lt.s32.totalorder %s1530_s21, %s1524_s17 }
 0x391   : > { %953 = vst.msk [vmem:[%s386_s25 + $0x8] sm:$0xf] %vm638_vm2, %v949_v39  ;;  %954 = vst.msk [vmem:[%s386_s25 + $0xc] sm:$0xf] %vm638_vm2, %v950_v40 }
 0x392   : > { %p1527_p13 = pneg %p1526_p3  ;;  %p1533_p8 = por %p1532_p6, %p1531_p4 }
 0x394   : > { %p1534_p12 = pnand %p1533_p8, %p1527_p13 }
 0x396   : > { %1537 = shalt.err (!%p1534_p12)
}
 0x397   : > { %s1538_s30 = scalar_lea.hbm %s2037_s12, 256  ;;  %s1542_s1 = scalar_lea.hbm %s2105_s8, 512 }
 0x398   : > { %p1539_p11 = scmp.ne.s32.totalorder %s2037_s12, %s1538_s30  ;;  %p1543_p9 = scmp.lt.u32.totalorder %s2037_s12, %s2105_s8 }
 0x399   : > { %p1544_p1 = scmp.lt.u32.totalorder %s1542_s1, %s1538_s30  ;;  %p1546_p7 = scmp.lt.u32.totalorder %s1538_s30, %s2037_s12 }
 0x39a   : > { %p1540_p0 = pnand %p1539_p11, %p1777_p10 }
 0x39b   : > { %p1545_p2 = por %p1544_p1, %p1543_p9 }
 0x39c   : > { %p1541_p5 = pneg %p1540_p0 }
 0x39d   : > { %p1547_p3 = por %p1546_p7, %p1545_p2 }
 0x39f   : > { %p1548_p13 = pnand %p1547_p3, %p1541_p5 }
 0x3a1   : > { %1551 = shalt.err (!%p1548_p13)
}
 0x3a2   : > { %1287 = dma.vmem_to_hbm [thread:$0]  (%p1777_p10), %s2039_s15, 256, %s2037_s12, %s971_s22, %s2138_s14, %s2138_s14, %s1634_s16  }
 0x3a3 PF: > { %s2139_s0 = sld [smem:[#allocation18_spill]]  ;;  %s1048_s25 = sand.u32 1, %s1598_s27  }
 0x3a4   : > { %p2141_p6 = scmp.ge.s32.totalorder %s1618_s10, 2  ;;  %s1049_s11 = scalar_lea.sflag [#allocation4], %s1048_s25 }
 0x3a9   : > { %p2140_p4 = scmp.ne.s32.totalorder %s2139_s0, 0 }
 0x3ab   : > { %p1301_p8 = pnand %p2141_p6, %p2140_p4 }
 0x3ad   : > { %1585 = dma.done.wait (!%p1301_p8), %s1049_s11, 128  }
 0x3ae   : > { %1587 = vsyncadd (!%p1301_p8), %s1049_s11, 4294967168  ;;  %s2142_s26 = sadd.s32 4294967294, %s1618_s10  }
 0x3af   : > { %s1057_s4 = sand.u32 1, %s2142_s26  }
 0x3b0   : > { %s1058_s17 = scalar_lea.sflag [#allocation9], %s1057_s4 }
 0x3b1   : > { %1589 = dma.done.wait (!%p1301_p8), %s1058_s17, 512  }
 0x3b2   : > { %1591 = vsyncadd (!%p1301_p8), %s1058_s17, 4294966784  ;;  %s1076_s19 = scalar_lea.sflag [#allocation12], %s1048_s25 }
 0x3b3   : > { %1593 = dma.done.wait (!%p1301_p8), %s1076_s19, 256  }
 0x3b4   : > { %1595 = vsyncadd (!%p1301_p8), %s1076_s19, 4294967040  ;;  %s32_s10 = sadd.s32 1, %s1618_s10   ;;  %s2143_s16 = sld [smem:[#allocation19_spill]] }
 0x3b5   : > { %p29_p10 = scmp.ge.s32.totalorder %s32_s10, 4   ;;  %s2144_s27 = smov %s1602_s28 }
 0x3b6   : > { %s2145_s28 = smov %s1606_s29  ;;  %s2146_s29 = smov %s1786_s20 }
 0x3b7   : > { %s2147_s30 = smov %s1614_s9  ;;  %31 = sbr.rel (!%p29_p10) target bundleno = 17 (0x11), region = 138 }
 0x3ba   : > { %s2148_s9 = smov %s2143_s16 }
 0x3be   :  { %1081 = vsyncpa [#allocation3], 1 }
 0x3bf   :  { %1083 = vsyncpa [#allocation3 + $0x1], 1 }
 0x3c0   :  { %1084 = vsyncpa [#allocation6], 1 }
 0x3c1   :  { %1085 = vsyncpa [#allocation4], 1 }
 0x3c2   :  { %1087 = vsyncpa [#allocation4 + $0x1], 1 }
 0x3c3   :  { %1088 = vsyncpa [#allocation9], 1 }
 0x3c4   :  { %1090 = vsyncpa [#allocation9 + $0x1], 1 }
 0x3c5   :  { %1091 = vsyncpa [#allocation12], 1 }
 0x3c6   :  { %1093 = vsyncpa [#allocation12 + $0x1], 1 }

</bundles_post_ra>
